<compile_context>
chip_gen: v7x
topology: tpu7x:2x2x1
jax: 0.10.0
libtpu: 0.0.40
codegen_flags: <defaults>
</compile_context>

<pallas_src>
import functools

import jax
import jax.numpy as jnp
from jax.experimental import pallas as pl
from jax.experimental.pallas import tpu as pltpu

_SQRT_HALF = 0.7071067811865476
_LN_EPS = 1e-5
_ROW_ALIGN = 16                       # bf16 min sublane tile (16, 128)
_VMEM_LIMIT = 32 * 1024 * 1024        # raise scoped VMEM (v5e default is 16 MiB)
_COMPUTE_DTYPE = jnp.bfloat16         # MXU-native operand / activation dtype


def _round_up(n, m):
    return ((n + m - 1) // m) * m


def _pick_row_tile(m, max_tm=512):
    """Largest 16-aligned divisor of m that is <= max_tm, preferring grid >= 2
    so both v7x TensorCores get work and DMA/compute can overlap."""
    best_single, best_multi = None, None
    t = _ROW_ALIGN
    while t <= min(m, max_tm):
        if m % t == 0:
            best_single = t
            if m // t >= 2:
                best_multi = t
        t += _ROW_ALIGN
    if best_multi is not None:
        return best_multi
    if best_single is not None:
        return best_single
    return m


# ----------------------------------------------------------------------------
# In-kernel math helpers (VPU/EUP, f32)
# ----------------------------------------------------------------------------
def _erf_f32(x):
    # Abramowitz & Stegun 7.1.26 rational approximation, |err| < 1.5e-7.
    p = 0.3275911
    a1, a2, a3, a4, a5 = (0.254829592, -0.284496736, 1.421413741,
                          -1.453152027, 1.061405429)
    sign = jnp.where(x >= 0.0, 1.0, -1.0).astype(x.dtype)
    ax = jnp.abs(x)
    t = pl.reciprocal(1.0 + p * ax, approx=True)        # EUP divide
    poly = ((((a5 * t + a4) * t + a3) * t + a2) * t + a1) * t
    return sign * (1.0 - poly * jnp.exp(-ax * ax))


def _gelu_exact(x):
    # Exact (erf-based) GELU, matching torch.nn.GELU() semantics.
    return 0.5 * x * (1.0 + _erf_f32(x * _SQRT_HALF))


def _layernorm_f32(x, gamma, beta):
    mu = jnp.mean(x, axis=-1, keepdims=True)
    c = x - mu
    var = jnp.mean(c * c, axis=-1, keepdims=True)
    return c * jax.lax.rsqrt(var + _LN_EPS) * gamma + beta


# ----------------------------------------------------------------------------
# Pallas kernels (row-blocked refs first, constant parameter refs after)
# ----------------------------------------------------------------------------
def _linear_kernel(x_ref, w_ref, b_ref, o_ref):
    # o = x @ W + b  (patch embedding)
    acc = jnp.dot(x_ref[...].astype(w_ref.dtype), w_ref[...],
                  preferred_element_type=jnp.float32)
    o_ref[...] = (acc + b_ref[...].astype(jnp.float32)).astype(o_ref.dtype)


def _ln_linear_kernel(x_ref, g_ref, be_ref, w_ref, b_ref, o_ref):
    # o = LayerNorm(x) @ W + b    (LN in f32; MXU fed bf16 operands)
    x = x_ref[...].astype(jnp.float32)
    y = _layernorm_f32(x, g_ref[...].astype(jnp.float32),
                       be_ref[...].astype(jnp.float32))
    acc = jnp.dot(y.astype(w_ref.dtype), w_ref[...],
                  preferred_element_type=jnp.float32)
    o_ref[...] = (acc + b_ref[...].astype(jnp.float32)).astype(o_ref.dtype)


def _block_tail_kernel(a_ref, x_ref, wp_ref, bp_ref, g2_ref, be2_ref,
                       w1_ref, b1_ref, w2_ref, b2_ref, o_ref):
    # Fused transformer-block tail:
    #   x1 = attn @ Wp + bp + x                (attention proj + residual)
    #   h  = LayerNorm(x1) @ W1 + b1           (norm2 + fc1)
    #   o  = GELU(h) @ W2 + b2 + x1            (gelu + fc2 + residual)
    x1 = jnp.dot(a_ref[...], wp_ref[...], preferred_element_type=jnp.float32)
    x1 = x1 + bp_ref[...].astype(jnp.float32) + x_ref[...].astype(jnp.float32)

    y = _layernorm_f32(x1, g2_ref[...].astype(jnp.float32),
                       be2_ref[...].astype(jnp.float32))
    h = jnp.dot(y.astype(w1_ref.dtype), w1_ref[...],
                preferred_element_type=jnp.float32)
    h = h + b1_ref[...].astype(jnp.float32)

    g = _gelu_exact(h)
    acc = jnp.dot(g.astype(w2_ref.dtype), w2_ref[...],
                  preferred_element_type=jnp.float32)
    o_ref[...] = (acc + b2_ref[...].astype(jnp.float32) + x1).astype(o_ref.dtype)


def _mha_batch_kernel(qkv_ref, o_ref, *, num_heads, head_dim, seq_len, scale):
    # One batch element per grid step.  qkv_ref: (1, T_pad, 3*D) laid out as
    # [q | k | v] with heads contiguous (same as reshape(B, T, 3, H, hd)).
    d_model = num_heads * head_dim
    for h in range(num_heads):                       # static, unrolled
        q = qkv_ref[0, :, h * head_dim:(h + 1) * head_dim]
        k = qkv_ref[0, :, d_model + h * head_dim:d_model + (h + 1) * head_dim]
        v = qkv_ref[0, :, 2 * d_model + h * head_dim:
                    2 * d_model + (h + 1) * head_dim]
        s = jax.lax.dot_general(q, k, (((1,), (1,)), ((), ())),
                                preferred_element_type=jnp.float32) * scale
        if seq_len < s.shape[-1]:
            # Mask padded key columns so token padding never changes results.
            col = jax.lax.broadcasted_iota(jnp.int32, s.shape, 1)
            s = jnp.where(col < seq_len, s, -1e30)
        m = jnp.max(s, axis=-1, keepdims=True)
        p = jnp.exp(s - m)
        l = jnp.sum(p, axis=-1, keepdims=True)
        p = p * pl.reciprocal(l, approx=True)        # EUP softmax denom
        o = jnp.dot(p.astype(v.dtype), v, preferred_element_type=jnp.float32)
        o_ref[0, :, h * head_dim:(h + 1) * head_dim] = o.astype(o_ref.dtype)


# ----------------------------------------------------------------------------
# pallas_call wrappers
# ----------------------------------------------------------------------------
def _row_call(kernel, row_inputs, const_inputs, out_cols, out_dtype, *, max_tm=512):
    """Run `kernel` over row-tiled 2D inputs; const_inputs passed whole."""
    m = row_inputs[0].shape[0]
    m_pad = _round_up(m, _ROW_ALIGN)
    if m_pad != m:
        row_inputs = [jnp.pad(a, ((0, m_pad - m), (0, 0))) for a in row_inputs]
    tm = _pick_row_tile(m_pad, max_tm)

    row_specs = [pl.BlockSpec((tm, a.shape[1]), lambda i: (i, 0))
                 for a in row_inputs]
    const_specs = [pl.BlockSpec(a.shape, lambda i: (0, 0))
                   for a in const_inputs]

    out = pl.pallas_call(
        kernel,
        out_shape=jax.ShapeDtypeStruct((m_pad, out_cols), out_dtype),
        grid_spec=pltpu.PrefetchScalarGridSpec(
            num_scalar_prefetch=0,
            grid=(m_pad // tm,),
            in_specs=row_specs + const_specs,
            out_specs=pl.BlockSpec((tm, out_cols), lambda i: (i, 0)),
        ),
        compiler_params=pltpu.CompilerParams(
            dimension_semantics=("parallel",),
            vmem_limit_bytes=_VMEM_LIMIT),
    )(*row_inputs, *const_inputs)
    return out if m_pad == m else out[:m]


def _mha(qkv3d, seq_len, num_heads, head_dim, scale, out_dtype):
    """qkv3d: (B, T_pad, 3*D).  Returns (B, T_pad, D) attention output."""
    b, t_pad, three_d = qkv3d.shape
    d_model = num_heads * head_dim
    kern = functools.partial(_mha_batch_kernel, num_heads=num_heads,
                             head_dim=head_dim, seq_len=seq_len, scale=scale)
    return pl.pallas_call(
        kern,
        out_shape=jax.ShapeDtypeStruct((b, t_pad, d_model), out_dtype),
        grid_spec=pltpu.PrefetchScalarGridSpec(
            num_scalar_prefetch=0,
            grid=(b,),
            in_specs=[pl.BlockSpec((1, t_pad, three_d), lambda i: (i, 0, 0))],
            out_specs=pl.BlockSpec((1, t_pad, d_model), lambda i: (i, 0, 0)),
        ),
        compiler_params=pltpu.CompilerParams(
            dimension_semantics=("parallel",),
            vmem_limit_bytes=_VMEM_LIMIT),
    )(qkv3d)


# ----------------------------------------------------------------------------
# Full ViT forward (Pallas path)
# ----------------------------------------------------------------------------
def vit_forward(x_img, params, cfg):
    b, c_in, h_img, _ = x_img.shape
    ps = cfg["patch_size"]
    d_model = cfg["embed_dim"]
    n_heads = cfg["num_heads"]
    hd = d_model // n_heads
    nc = cfg["num_classes"]
    n_side = h_img // ps
    n_patches = n_side * n_side
    t = n_patches + 1
    t_pad = _round_up(t, _ROW_ALIGN)
    cdt = _COMPUTE_DTYPE
    scale = float(hd) ** -0.5

    def wcast(a):                       # MXU-native bf16 weights (cast once)
        return a.astype(cdt)

    # Patch extraction: pure layout (equivalent to the stride-ps Conv2d unfold).
    xp = x_img.reshape(b, c_in, n_side, ps, n_side, ps)
    xp = xp.transpose(0, 2, 4, 1, 3, 5).reshape(b * n_patches, c_in * ps * ps)
    xp = xp.astype(cdt)

    # Patch embedding (Conv2d == per-patch linear) on the MXU.
    emb = _row_call(_linear_kernel, [xp],
                    [wcast(params["w_patch"]), params["b_patch"].reshape(1, -1)],
                    d_model, cdt)
    emb = emb.reshape(b, n_patches, d_model)

    cls = jnp.broadcast_to(params["cls_token"], (b, 1, d_model)).astype(cdt)
    x = jnp.concatenate([cls, emb], axis=1) + params["pos_embed"].astype(cdt)
    # Pad the token axis ONCE; padded keys are masked in attention and padded
    # rows never mix with real tokens elsewhere (all other kernels are row-wise).
    if t_pad != t:
        x = jnp.pad(x, ((0, 0), (0, t_pad - t), (0, 0)))
    x2d = x.reshape(b * t_pad, d_model)

    # TODO(synk): dropout layers are identity (inference forward); training-mode
    # stochastic dropout is not implemented in-kernel.
    for blk in params["blocks"]:
        # norm1 + QKV projection (fused)
        qkv = _row_call(_ln_linear_kernel, [x2d],
                        [blk["g1"].reshape(1, -1), blk["be1"].reshape(1, -1),
                         wcast(blk["w_qkv"]), blk["b_qkv"].reshape(1, -1)],
                        3 * d_model, cdt)
        # Attention reads q/k/v straight from the (B, T_pad, 3*D) buffer (no XLA
        # transposes) and writes (B, T_pad, D), so the reshape back is free.
        attn = _mha(qkv.reshape(b, t_pad, 3 * d_model), t, n_heads, hd, scale, cdt)
        attn2d = attn.reshape(b * t_pad, d_model)
        # proj + residual + norm2 + fc1 + GELU + fc2 + residual (one fused kernel)
        x2d = _row_call(_block_tail_kernel, [attn2d, x2d],
                        [wcast(blk["w_proj"]), blk["b_proj"].reshape(1, -1),
                         blk["g2"].reshape(1, -1), blk["be2"].reshape(1, -1),
                         wcast(blk["w_fc1"]), blk["b_fc1"].reshape(1, -1),
                         wcast(blk["w_fc2"]), blk["b_fc2"].reshape(1, -1)],
                        d_model, cdt)

    # Final LayerNorm + classification head on the CLS token.
    cls_rows = x2d.reshape(b, t_pad, d_model)[:, 0, :]              # (B, D)
    nc_pad = _round_up(nc, 128)         # lane-dense output store; slice after
    w_head = jnp.pad(params["w_head"], ((0, 0), (0, nc_pad - nc)))
    b_head = jnp.pad(params["b_head"], (0, nc_pad - nc)).reshape(1, -1)
    logits = _row_call(_ln_linear_kernel, [cls_rows],
                       [params["g_f"].reshape(1, -1),
                        params["be_f"].reshape(1, -1),
                        wcast(w_head), b_head],
                       nc_pad, jnp.float32)
    return logits[:, :nc]


# ----------------------------------------------------------------------------
# Pure-JAX f32 reference (mirrors the PyTorch forward, eval mode)
# ----------------------------------------------------------------------------
def _reference_forward(x_img, params, cfg):
    b, c_in, h_img, _ = x_img.shape
    ps = cfg["patch_size"]
    d_model = cfg["embed_dim"]
    n_heads = cfg["num_heads"]
    hd = d_model // n_heads
    n_side = h_img // ps
    n_patches = n_side * n_side

    xp = x_img.reshape(b, c_in, n_side, ps, n_side, ps)
    xp = xp.transpose(0, 2, 4, 1, 3, 5).reshape(b, n_patches, c_in * ps * ps)
    emb = xp @ params["w_patch"] + params["b_patch"]
    cls = jnp.broadcast_to(params["cls_token"], (b, 1, d_model))
    x = jnp.concatenate([cls, emb], axis=1) + params["pos_embed"]
    t = x.shape[1]

    def ln(v, g, be):
        mu = v.mean(-1, keepdims=True)
        var = ((v - mu) ** 2).mean(-1, keepdims=True)
        return (v - mu) / jnp.sqrt(var + _LN_EPS) * g + be

    for blk in params["blocks"]:
        h = ln(x, blk["g1"], blk["be1"])
        qkv = h @ blk["w_qkv"] + blk["b_qkv"]
        qkv = qkv.reshape(b, t, 3, n_heads, hd).transpose(2, 0, 3, 1, 4)
        q, k, v = qkv[0], qkv[1], qkv[2]
        attn = (q @ jnp.swapaxes(k, -1, -2)) * (hd ** -0.5)
        attn = jax.nn.softmax(attn, axis=-1)
        o = (attn @ v).transpose(0, 2, 1, 3).reshape(b, t, d_model)
        x = x + (o @ blk["w_proj"] + blk["b_proj"])
        h2 = ln(x, blk["g2"], blk["be2"])
        h2 = h2 @ blk["w_fc1"] + blk["b_fc1"]
        h2 = 0.5 * h2 * (1.0 + jax.lax.erf(h2 * _SQRT_HALF))   # exact GELU
        x = x + (h2 @ blk["w_fc2"] + blk["b_fc2"])

    x = ln(x, params["g_f"], params["be_f"])
    return x[:, 0] @ params["w_head"] + params["b_head"]


# ----------------------------------------------------------------------------
# Parameter init (deterministic, shapes match the PyTorch module)
# ----------------------------------------------------------------------------
def _init_params(key, cfg):
    d_model = cfg["embed_dim"]
    ps = cfg["patch_size"]
    c_in = cfg["in_channels"]
    hidden = int(d_model * cfg["mlp_ratio"])
    nc = cfg["num_classes"]
    p_feat = c_in * ps * ps
    n_patches = (cfg["img_size"] // ps) ** 2

    ks = jax.random.split(key, 4 + 4 * cfg["depth"])

    def nrm(k, shape):
        return (0.02 * jax.random.normal(k, shape)).astype(jnp.float32)

    params = {
        "w_patch": nrm(ks[0], (p_feat, d_model)),
        "b_patch": jnp.zeros((d_model,), jnp.float32),
        "cls_token": nrm(ks[1], (1, 1, d_model)),
        "pos_embed": nrm(ks[2], (1, n_patches + 1, d_model)),
        "g_f": jnp.ones((d_model,), jnp.float32),
        "be_f": jnp.zeros((d_model,), jnp.float32),
        "w_head": nrm(ks[3], (d_model, nc)),
        "b_head": jnp.zeros((nc,), jnp.float32),
        "blocks": [],
    }
    idx = 4
    for _ in range(cfg["depth"]):
        params["blocks"].append({
            "g1": jnp.ones((d_model,), jnp.float32),
            "be1": jnp.zeros((d_model,), jnp.float32),
            "w_qkv": nrm(ks[idx], (d_model, 3 * d_model)),
            "b_qkv": jnp.zeros((3 * d_model,), jnp.float32),
            "w_proj": nrm(ks[idx + 1], (d_model, d_model)),
            "b_proj": jnp.zeros((d_model,), jnp.float32),
            "g2": jnp.ones((d_model,), jnp.float32),
            "be2": jnp.zeros((d_model,), jnp.float32),
            "w_fc1": nrm(ks[idx + 2], (d_model, hidden)),
            "b_fc1": jnp.zeros((hidden,), jnp.float32),
            "w_fc2": nrm(ks[idx + 3], (hidden, d_model)),
            "b_fc2": jnp.zeros((d_model,), jnp.float32),
        })
        idx += 4
    return params


if __name__ == "__main__":
    cfg = dict(img_size=32, patch_size=8, in_channels=3, num_classes=100,
               embed_dim=256, depth=2, num_heads=2, mlp_ratio=4)
    batch = 2

    key = jax.random.PRNGKey(0)
    kx, kp = jax.random.split(key)
    x_img = jax.random.normal(
        kx, (batch, cfg["in_channels"], cfg["img_size"], cfg["img_size"]),
        dtype=jnp.float32)
    params = _init_params(kp, cfg)

    out = vit_forward(x_img, params, cfg)
    out = jax.block_until_ready(out)

    with jax.default_matmul_precision("highest"):
        ref = _reference_forward(x_img, params, cfg)
    ref = jax.block_until_ready(ref)

    assert out.shape == (batch, cfg["num_classes"])
    assert bool(jnp.all(jnp.isfinite(out)))
    out_f32 = out.astype(jnp.float32)
    max_err = float(jnp.max(jnp.abs(out_f32 - ref)))
    # bf16 MXU operands / bf16 inter-kernel activations vs. f32 reference.
    assert jnp.allclose(out_f32, ref, atol=5e-2, rtol=5e-2), f"max err {max_err}"

    print("KERNEL_OK")
</pallas_src>

<mosaic_0001>
module attributes {stable_mosaic.version = 11 : i64} {
  func.func @_linear_kernel(%arg0: i32, %arg1: memref<16x192xbf16, #tpu.memory_space<vmem>>, %arg2: memref<192x256xbf16, #tpu.memory_space<vmem>>, %arg3: memref<1x256xf32, #tpu.memory_space<vmem>>, %arg4: memref<16x256xbf16, #tpu.memory_space<vmem>>) attributes {dimension_semantics = [#tpu.dimension_semantics<parallel>], iteration_bounds = array<i64: 2>, scalar_prefetch = 0 : i64, scratch_operands = 0 : i64, tpu.core_type = #tpu.core_type<tc>, window_params = [{transform_indices = @transform_0, window_bounds = array<i64: 16, 192>}, {pipeline_mode = #tpu.pipeline_mode<synchronous>, transform_indices = @transform_1, window_bounds = array<i64: 192, 256>}, {pipeline_mode = #tpu.pipeline_mode<synchronous>, transform_indices = @transform_2, window_bounds = array<i64: 1, 256>}, {transform_indices = @transform_3, window_bounds = array<i64: 16, 256>}]} {
    %c0 = arith.constant 0 : index
    %c0_0 = arith.constant 0 : index
    %0 = vector.load %arg1[%c0, %c0_0] : memref<16x192xbf16, #tpu.memory_space<vmem>>, vector<16x192xbf16>
    %c0_1 = arith.constant 0 : index
    %c0_2 = arith.constant 0 : index
    %1 = vector.load %arg2[%c0_1, %c0_2] : memref<192x256xbf16, #tpu.memory_space<vmem>>, vector<192x256xbf16>
    %cst = arith.constant dense<0.000000e+00> : vector<16x256xf32>
    %2 = tpu.matmul %0, %1, %cst {dimension_numbers = #tpu.dot_dimension_numbers<[1], [0], [0], [1], [0, 0, 1, 1], [], []>} : vector<16x192xbf16>, vector<192x256xbf16>, vector<16x256xf32> -> vector<16x256xf32>
    %c0_3 = arith.constant 0 : index
    %c0_4 = arith.constant 0 : index
    %3 = vector.load %arg3[%c0_3, %c0_4] : memref<1x256xf32, #tpu.memory_space<vmem>>, vector<1x256xf32>
    %4 = vector.broadcast %3 : vector<1x256xf32> to vector<16x256xf32>
    %5 = arith.addf %2, %4 : vector<16x256xf32>
    %6 = arith.truncf %5 : vector<16x256xf32> to vector<16x256xbf16>
    %c0_5 = arith.constant 0 : index
    %c0_6 = arith.constant 0 : index
    %7 = vector.load %arg4[%c0_5, %c0_6] : memref<16x256xbf16, #tpu.memory_space<vmem>>, vector<16x256xbf16>
    tpu.vector_store %arg4[%c0_5, %c0_6], %6 {strides = array<i32>} : memref<16x256xbf16, #tpu.memory_space<vmem>>, vector<16x256xbf16>,
    return
  }
  func.func @transform_0(%arg0: i32) -> (i32, i32) {
    %c0_i32 = arith.constant 0 : i32
    %c0_i32_0 = arith.constant 0 : i32
    return %arg0, %c0_i32 : i32, i32
  }
  func.func @transform_1(%arg0: i32) -> (i32, i32) {
    %c0_i32 = arith.constant 0 : i32
    %c0_i32_0 = arith.constant 0 : i32
    %c0_i32_1 = arith.constant 0 : i32
    return %c0_i32, %c0_i32_0 : i32, i32
  }
  func.func @transform_2(%arg0: i32) -> (i32, i32) {
    %c0_i32 = arith.constant 0 : i32
    %c0_i32_0 = arith.constant 0 : i32
    %c0_i32_1 = arith.constant 0 : i32
    return %c0_i32, %c0_i32_0 : i32, i32
  }
  func.func @transform_3(%arg0: i32) -> (i32, i32) {
    %c0_i32 = arith.constant 0 : i32
    %c0_i32_0 = arith.constant 0 : i32
    return %arg0, %c0_i32 : i32, i32
  }
}

</mosaic_0001>

<bundles_post_ra>
// kernel: tpu_custom_call.1
= control target key start
LH: loop header
LB: loop body
LE: loop exit
PB: predicated region body
PF: predicated region fallthrough
CT: control target
= control target key end

     0   :  { %8 = vsyncpa [#allocation3], 0  ;;  %s1062_s0 = inlined_call_operand.hbm [shape: bf16[32,192], index: 0, kind: input, shape index: {}]   ;;  %s1063_s1 = inlined_call_operand.hbm [shape: bf16[192,256], index: 1, kind: input, shape index: {}]   ;;  %s1064_s2 = inlined_call_operand.vmem [shape: f32[1,256], index: 2, kind: input, shape index: {}]   ;;  %s1065_s3 = inlined_call_operand.hbm [shape: bf16[32,256], index: 3, kind: output, shape index: {}]  }
   0x1   :  { %10 = vsyncpa [#allocation3 + $0x1], 0 }
   0x2   :  { %11 = vsyncpa [#allocation6], 0 }
   0x3   :  { %12 = vsyncpa [#allocation4], 0 }
   0x4   :  { %14 = vsyncpa [#allocation4 + $0x1], 0  ;;  %s844_s12 = smov 0   ;;  %s846_s13 = smov 0  }
   0x5   :  { %s848_s14 = smov 0   ;;  %s850_s15 = smov 0  }
   0x6 LB: > { %s865_s16 = sadd.s32 4294967295, %s815_s15   ;;  %s534_s17 = sadd.s32 4294967294, %s815_s15   ;;  %s815_s15 = sphi %s850_s15, %s1085_s15   ;;  %s811_s14 = sphi %s848_s14, %s1084_s14   ;;  %s807_s13 = sphi %s846_s13, %s1083_s13   ;;  %s803_s12 = sphi %s844_s12, %s1082_s12  }
   0x7   : > { %p40_p0 = scmp.ne.s32.totalorder %s807_s13, %s803_s12  ;;  %p1066_p1 = scmp.eq.s32.totalorder %s865_s16, 0 }
   0x8   : > { %p112_p3 = scmp.eq.s32.totalorder %s534_s17, 1  ;;  %p535_p5 = scmp.ge.s32.totalorder %s815_s15, 1 }
   0x9   : > { %p874_p4 = por %p1066_p1, %p40_p0  ;;  %p119_p7 = scmp.lt.s32.totalorder %s815_s15, 3 }
   0xa   : > { %p879_p6 = por %p112_p3, %p40_p0  ;;  %s817_s21 = smov [#allocation5]  }
   0xb   : > { %s1069_s18 = scalar_select %p874_p4, 1, 0 }
   0xc   : > { %s1070_s19 = scalar_select %p879_p6, 1, 0 }
   0xd   : > { %p884_p8 = pnand %p535_p5, %p119_p7  ;;  %s131_s22 = sshll.u32 %s817_s21, 4  ;;  %s888_s22 = int_to_ptr.vmem [resolvable:$true] %s131_s22 }
   0xe   : > { %s900_s24 = sadd.s32 1, %s815_s15   ;;  %s27_s25 = sadd.s32 1, %s811_s14 }
   0xf   : > { %s1071_s20 = scalar_select %p884_p8, 1, 0 }
  0x10   : > { %p595_p9 = pneg %p884_p8  ;;  %s24_s26 = ssub.s32 %s815_s15, %s900_s24 }
  0x11   : > { %s687_s29 = scalar_lea.hbm %s1063_s1, 3072 }
  0x12   : > { %p895_p11 = pnand %p595_p9, %p1066_p1  ;;  %p688_p12 = scmp.ne.s32.totalorder %s1063_s1, %s687_s29 }
  0x13   : > { %p694_p5 = scmp.lt.u32.totalorder %s687_s29, %s1063_s1 }
  0x14   : > { %p689_p13 = pneg %p895_p11 }
  0x16   : > { %p690_p0 = pnand %p689_p13, %p688_p12 }
  0x18   : > { %p691_p3 = pneg %p690_p0 }
  0x1a   : > { %p696_p7 = pnand %p694_p5, %p691_p3 }
  0x1c   : > { %699 = shalt.err (!%p696_p7)
}
  0x1d   : > { %s700_s7 = scalar_lea.vmem %s888_s22, 3072  ;;  %p708_p2 = scmp.lt.s32.totalorder %s888_s22, %s888_s22 }
  0x1e   : > { %p701_p9 = scmp.ne.s32.totalorder %s888_s22, %s700_s7  ;;  %p709_p6 = scmp.lt.s32.totalorder %s700_s7, %s700_s7 }
  0x20   : > { %p703_p10 = pnand %p701_p9, %p689_p13  ;;  %p710_p4 = por %p709_p6, %p708_p2 }
  0x22   : > { %p704_p1 = pneg %p703_p10 }
  0x24   : > { %p711_p8 = pnand %p710_p4, %p704_p1 }
  0x26   : > { %714 = shalt.err (!%p711_p8)
}
  0x27   : > { %s818_s8 = smov 128   ;;  %s819_s9 = smov 8  }
  0x28   : > { %598 = dma.hbm_to_vmem [thread:$0]  (!%p895_p11), %s1063_s1, 3072, %s888_s22, [#allocation6], %s818_s8, %s818_s8, %s819_s9  }
  0x29   : > { %p25_p1 = scmp.eq.s32.totalorder %s24_s26, 0  ;;  %p34_p2 = scmp.ne.s32.totalorder %s811_s14, %s807_s13 }
  0x2a   : > { %p35_p4 = scmp.eq.s32.totalorder %s815_s15, 0  ;;  %p608_p6 = scmp.lt.s32.totalorder %s815_s15, 2 }
  0x2b   : > { %s934_s17 = scalar_select %p25_p1, %s811_s14, %s27_s25  }
  0x2c   : > { %p36_p8 = por %p35_p4, %p34_p2  ;;  %p1073_p10 = scmp.eq.s32.totalorder %s865_s16, 1 }
  0x2d   : > { %s148_s23 = sand.u32 1, %s811_s14   ;;  %s582_s27 = sshll.u32 %s815_s15, 8 }
  0x2e   : > { %p938_p12 = por %p1073_p10, %p34_p2  ;;  %s538_s28 = sshll.u32 %s148_s23, 4 }
  0x2f   : > { %s947_s4 = scalar_lea.hbm %s1062_s0, %s582_s27  ;;  %s152_s22 = scalar_lea.vmem [#allocation2], %s538_s28 }
  0x30   : > { %s160_s25 = sshll.u32 %s152_s22, 4  ;;  %p949_p11 = pnand %p608_p6, %p36_p8  ;;  %s953_s25 = int_to_ptr.vmem [resolvable:$true] %s160_s25 }
  0x31   : > { %s955_s5 = scalar_lea.sflag [#allocation3], %s148_s23  ;;  %s715_s6 = scalar_lea.hbm %s947_s4, 256 }
  0x32   : > { %p716_p13 = scmp.ne.s32.totalorder %s947_s4, %s715_s6  ;;  %p717_p0 = pneg %p949_p11 }
  0x33   : > { %s720_s11 = scalar_lea.hbm %s1062_s0, 512  ;;  %p721_p7 = scmp.lt.u32.totalorder %s947_s4, %s1062_s0 }
  0x34   : > { %p718_p3 = pnand %p717_p0, %p716_p13  ;;  %p722_p9 = scmp.lt.u32.totalorder %s720_s11, %s715_s6 }
  0x35   : > { %p724_p2 = scmp.lt.u32.totalorder %s715_s6, %s947_s4 }
  0x36   : > { %p719_p5 = pneg %p718_p3  ;;  %p723_p1 = por %p722_p9, %p721_p7 }
  0x38   : > { %p725_p4 = por %p724_p2, %p723_p1 }
  0x3a   : > { %p726_p6 = pnand %p725_p4, %p719_p5 }
  0x3c   : > { %729 = shalt.err (!%p726_p6)
}
  0x3d   : > { %s730_s23 = scalar_lea.vmem %s953_s25, 256  ;;  %s820_s29 = smov [#allocation2]  }
  0x3e   : > { %p731_p8 = scmp.ne.s32.totalorder %s953_s25, %s730_s23  ;;  %s735_s30 = sshll.u32 %s820_s29, 4  ;;  %s736_s30 = int_to_ptr.vmem [resolvable:$false] %s735_s30 }
  0x3f   : > { %s737_s22 = scalar_lea.vmem %s736_s30, 512  ;;  %p738_p3 = scmp.lt.s32.totalorder %s953_s25, %s736_s30 }
  0x40   : > { %p733_p10 = pnand %p731_p8, %p717_p0  ;;  %p739_p7 = scmp.lt.s32.totalorder %s737_s22, %s730_s23 }
  0x42   : > { %p734_p13 = pneg %p733_p10  ;;  %p740_p9 = por %p739_p7, %p738_p3 }
  0x44   : > { %p741_p1 = pnand %p740_p9, %p734_p13 }
  0x46   : > { %744 = shalt.err (!%p741_p1)
}
  0x47   : > { %602 = dma.hbm_to_vmem [thread:$0]  (!%p949_p11), %s947_s4, 256, %s953_s25, %s955_s5, %s818_s8, %s818_s8, %s819_s9  }
  0x48   : > { %p1076_p0 = scmp.ne.s32.totalorder %s1071_s20, 0 }
  0x49   : > { %s989_s6 = sand.u32 (!%p1076_p0), 1, %s807_s13   ;;  %p1077_p5 = scmp.ne.s32.totalorder (!%p1076_p0), %s1069_s18, 0 }
  0x4a   : > { %172 = sbr.rel (%p1076_p0) target bundleno = 368 (0x170), region = 32  ;;  %s543_s7 = sshll.u32 (!%p1076_p0), %s989_s6, 4 }
  0x4b   : > { %s175_s10 = scalar_lea.sflag (!%p1076_p0), [#allocation3], %s989_s6  ;;  %s995_s26 = scalar_lea.vmem (!%p1076_p0), [#allocation2], %s543_s7 }
  0x51   : > { %790 = dma.done.wait (%p1077_p5), %s175_s10, 256  }
  0x52   : > { %792 = vsyncadd (%p1077_p5), %s175_s10, 4294967040  ;;  %p1078_p11 = scmp.eq.s32.totalorder %s865_s16, 0 }
  0x54   : > { %794 = dma.done.wait (%p1078_p11), [#allocation6], 3072   ;;  %p1079_p2 = pmov %p1078_p11 }
  0x55   : > { %v648_v0 = vld [vmem:[#allocation5 + $0x4] ss:$8 sps:$4 sm:$0xff]   ;;  %v650_v1 = vld [vmem:[#allocation5] ss:$8 sps:$4 sm:$0xff]   ;;  %v651_v2 = vld [vmem:[#allocation5 + $0x14] ss:$8 sps:$4 sm:$0xff]   ;;  %v236_v26 = vlaneseq }
  0x56   : > { %796 = vsyncadd (%p1079_p2), [#allocation6], 4294964224  ;;  %379 = vmatprep.subr.bf16.mxu0 %v648_v0  ;;  %v653_v3 = vld [vmem:[#allocation5 + $0x10] ss:$8 sps:$4 sm:$0xff]   ;;  %v654_v4 = vld [vmem:[#allocation5 + $0x24] ss:$8 sps:$4 sm:$0xff]  }
  0x57   : > { %380 = vmatpush1.bf16.msra.mxu0 %v650_v1  ;;  %v656_v5 = vld [vmem:[#allocation5 + $0x20] ss:$8 sps:$4 sm:$0xff]   ;;  %v657_v6 = vld [vmem:[#allocation5 + $0x34] ss:$8 sps:$4 sm:$0xff]   ;;  %v659_v7 = vld [vmem:[#allocation5 + $0x30] ss:$8 sps:$4 sm:$0xff]  }
  0x58   : > { %381 = vmatprep.subr.bf16.mxu0 %v651_v2  ;;  %v660_v8 = vld [vmem:[#allocation5 + $0x44] ss:$8 sps:$4 sm:$0xff]   ;;  %v662_v9 = vld [vmem:[#allocation5 + $0x40] ss:$8 sps:$4 sm:$0xff]   ;;  %v663_v10 = vld [vmem:[#allocation5 + $0x54] ss:$8 sps:$4 sm:$0xff]  }
  0x59   : > { %vm375_vm0 = vcmask 523264   ;;  %v686_v11 = vld [vmem:[%s995_s26 + $0x4] ss:$8 sps:$4 sm:$0xff]   ;;  %v665_v12 = vld [vmem:[#allocation5 + $0x50] ss:$8 sps:$4 sm:$0xff]   ;;  %v237_v27 = vshrl.u32 %v236_v26, 7 }
  0x5a   : > { %572 = vmatprep.mubr.msk.bf16.mxu0 %vm375_vm0, %v686_v11  ;;  %v666_v13 = vld [vmem:[#allocation5 + $0x64] ss:$8 sps:$4 sm:$0xff]   ;;  %v668_v14 = vld [vmem:[#allocation5 + $0x60] ss:$8 sps:$4 sm:$0xff]   ;;  %v669_v15 = vld [vmem:[#allocation5 + $0x74] ss:$8 sps:$4 sm:$0xff]  }
  0x5b   : > { %382 = vmatpush1.bf16.msra.mxu0 %v653_v3  ;;  %v671_v16 = vld [vmem:[#allocation5 + $0x70] ss:$8 sps:$4 sm:$0xff]   ;;  %v672_v17 = vld [vmem:[#allocation5 + $0x84] ss:$8 sps:$4 sm:$0xff]   ;;  %v674_v18 = vld [vmem:[#allocation5 + $0x80] ss:$8 sps:$4 sm:$0xff]  }
  0x5c   : > { %383 = vmatprep.subr.bf16.mxu0 %v654_v4  ;;  %v675_v19 = vld [vmem:[#allocation5 + $0x94] ss:$8 sps:$4 sm:$0xff]   ;;  %v677_v20 = vld [vmem:[#allocation5 + $0x90] ss:$8 sps:$4 sm:$0xff]   ;;  %v678_v21 = vld [vmem:[#allocation5 + $0xa4] ss:$8 sps:$4 sm:$0xff]  }
  0x5d   : > { %v680_v22 = vld [vmem:[#allocation5 + $0xa0] ss:$8 sps:$4 sm:$0xff]   ;;  %v681_v23 = vld [vmem:[#allocation5 + $0xb4] ss:$8 sps:$4 sm:$0xff]   ;;  %v683_v24 = vld [vmem:[#allocation5 + $0xb0] ss:$8 sps:$4 sm:$0xff]  }
  0x5e   : > { %v684_v25 = vld [vmem:[%s995_s26] ss:$8 sps:$4 sm:$0xff]   ;;  %v238_v28 = vsub.s32 0, %v237_v27  ;;  %v242_v30 = vsub.s32 1, %v237_v27  ;;  %s204_s8 = scalar_lea.vmem [#allocation7], %s543_s7  ;;  %s586_s4 = sshll.u32 %s865_s16, 8 }
  0x5f   : > { %384 = vmatpush1.bf16.msra.mxu0 %v656_v5  ;;  %v234_v29 = vld [vmem:[%s1064_s2] sm:$0x3]  ;;  %s451_s9 = sshll.u32 %s204_s8, 4  ;;  %s1018_s11 = scalar_lea.hbm %s1065_s3, %s586_s4  ;;  %s1013_s9 = int_to_ptr.vmem [resolvable:$true] %s451_s9 }
  0x60   : > { %385 = vmatprep.subr.bf16.mxu0 %v657_v6  ;;  %v239_v31 = vrot.slane %v234_v29, %v238_v28  ;;  %v243_v32 = vrot.slane %v234_v29, %v242_v30  ;;  %s437_s27 = scalar_lea.sflag [#allocation4], %s989_s6  ;;  %s745_s28 = scalar_lea.vmem %s1013_s9, 256 }
  0x61   : > { %p746_p4 = scmp.ne.s32.totalorder %s1013_s9, %s745_s28  ;;  %s821_s16 = smov [#allocation7]  }
  0x62   : > { %s749_s23 = sshll.u32 %s821_s16, 4  ;;  %s750_s23 = int_to_ptr.vmem [resolvable:$false] %s749_s23 }
  0x63   : > { %386 = vmatpush1.bf16.msra.mxu0 %v659_v7  ;;  %p747_p6 = pnand %p746_p4, %p938_p12  ;;  %s751_s29 = scalar_lea.vmem %s750_s23, 512 }
  0x64   : > { %387 = vmatprep.subr.bf16.mxu0 %v660_v8  ;;  %p752_p10 = scmp.lt.s32.totalorder %s1013_s9, %s750_s23  ;;  %p753_p13 = scmp.lt.s32.totalorder %s751_s29, %s745_s28 }
  0x65   : > { %p748_p8 = pneg %p747_p6 }
  0x66   : > { %p754_p3 = por %p753_p13, %p752_p10 }
  0x67   : > { %388 = vmatpush1.bf16.msra.mxu0 %v662_v9 }
  0x68   : > { %389 = vmatprep.subr.bf16.mxu0 %v663_v10  ;;  %p755_p7 = pnand %p754_p3, %p748_p8 }
  0x6b   : > { %390 = vmatpush1.bf16.msra.mxu0 %v665_v12 }
  0x6c   : > { %391 = vmatprep.subr.bf16.mxu0 %v666_v13 }
  0x6f   : > { %392 = vmatpush1.bf16.msra.mxu0 %v668_v14 }
  0x70   : > { %393 = vmatprep.subr.bf16.mxu0 %v669_v15 }
  0x73   : > { %394 = vmatpush1.bf16.msra.mxu0 %v671_v16 }
  0x74   : > { %395 = vmatprep.subr.bf16.mxu0 %v672_v17 }
  0x77   : > { %396 = vmatpush1.bf16.msra.mxu0 %v674_v18 }
  0x78   : > { %397 = vmatprep.subr.bf16.mxu0 %v675_v19 }
  0x7b   : > { %398 = vmatpush1.bf16.msra.mxu0 %v677_v20 }
  0x7c   : > { %399 = vmatprep.subr.bf16.mxu0 %v678_v21 }
  0x7f   : > { %400 = vmatpush1.bf16.msra.mxu0 %v680_v22 }
  0x80   : > { %401 = vmatprep.subr.bf16.mxu0 %v681_v23 }
  0x83   : > { %402 = vmatpush1.bf16.msra.mxu0 %v683_v24 }
  0x86   : > { %412 = vmatmul.mubr.bf16.vlgmr.msra.gmra.mrb[0].mxu0 %v684_v25 }
 0x159   : > { %v413_v33 = vpop.f32.mrb[0].mxu0 }
 0x15a   : > { %v414_v34 = vadd.f32 %v413_v33, %v239_v31  ;;  %v415_v35 = vpop.f32.mrb[1].mxu0 }
 0x15b   : > { %v416_v36 = vadd.f32 %v415_v35, %v243_v32  ;;  %v417_v37 = vpop.f32.mrb[2].mxu0 }
 0x15c   : > { %v418_v38 = vadd.f32 %v417_v37, %v239_v31  ;;  %v419_v39 = vpop.f32.mrb[3].mxu0 }
 0x15d   : > { %v583_v40 = vpack.c.bf16 %v416_v36, %v414_v34  ;;  %v420_v41 = vadd.f32 %v419_v39, %v243_v32 }
 0x15f   : > { %434 = vst [vmem:[%s204_s8] sm:$0xff] %v583_v40  ;;  %v584_v42 = vpack.c.bf16 %v420_v41, %v418_v38 }
 0x161   : > { %435 = vst [vmem:[%s204_s8 + $0x8] sm:$0xff] %v584_v42 }
 0x162   : > { %758 = shalt.err (!%p755_p7)
}
 0x163   : > { %s759_s30 = scalar_lea.hbm %s1018_s11, 256  ;;  %s763_s10 = scalar_lea.hbm %s1065_s3, 512 }
 0x164   : > { %p760_p9 = scmp.ne.s32.totalorder %s1018_s11, %s759_s30  ;;  %p764_p5 = scmp.lt.u32.totalorder %s1018_s11, %s1065_s3 }
 0x165   : > { %p765_p11 = scmp.lt.u32.totalorder %s763_s10, %s759_s30  ;;  %p767_p4 = scmp.lt.u32.totalorder %s759_s30, %s1018_s11 }
 0x166   : > { %p761_p1 = pnand %p760_p9, %p938_p12 }
 0x167   : > { %p766_p2 = por %p765_p11, %p764_p5 }
 0x168   : > { %p762_p0 = pneg %p761_p1 }
 0x169   : > { %p768_p6 = por %p767_p4, %p766_p2 }
 0x16b   : > { %p769_p8 = pnand %p768_p6, %p762_p0 }
 0x16d   : > { %772 = shalt.err (!%p769_p8)
}
 0x16e   : > { %s822_s20 = smov 128   ;;  %s823_s8 = smov 8  }
 0x16f   : > { %593 = dma.vmem_to_hbm [thread:$0]  (%p938_p12), %s1013_s9, 256, %s1018_s11, %s437_s27, %s822_s20, %s822_s20, %s823_s8  }
 0x170 PF: > { %s466_s4 = sand.u32 1, %s803_s12   ;;  %p1080_p10 = scmp.ne.s32.totalorder %s1070_s19, 0 }
 0x171   : > { %p1081_p13 = scmp.ge.s32.totalorder %s815_s15, 2  ;;  %s467_s25 = scalar_lea.sflag [#allocation4], %s466_s4 }
 0x173   : > { %p604_p3 = pnand %p1081_p13, %p1080_p10 }
 0x175   : > { %798 = dma.done.wait (!%p604_p3), %s467_s25, 256  }
 0x176   : > { %800 = vsyncadd (!%p604_p3), %s467_s25, 4294967040  ;;  %p17_p7 = scmp.ge.s32.totalorder %s900_s24, 4   ;;  %s1082_s12 = smov %s807_s13 }
 0x177   : > { %s1083_s13 = smov %s811_s14  ;;  %s1084_s14 = smov %s934_s17 }
 0x178   : > { %s1085_s15 = smov %s900_s24  ;;  %19 = sbr.rel (!%p17_p7) target bundleno = 6 (0x6), region = 81 }
 0x17f   :  { %472 = vsyncpa [#allocation3], 1 }
 0x180   :  { %474 = vsyncpa [#allocation3 + $0x1], 1 }
 0x181   :  { %475 = vsyncpa [#allocation6], 1 }
 0x182   :  { %476 = vsyncpa [#allocation4], 1 }
 0x183   :  { %478 = vsyncpa [#allocation4 + $0x1], 1 }

</bundles_post_ra>
